<compile_context>
chip_gen: v6e
topology: v6e:2x2x1
jax: 0.10.0
libtpu: 0.0.40
codegen_flags: <defaults>
</compile_context>

<pallas_src>
import functools

import jax
import jax.numpy as jnp
from jax.experimental import pallas as pl
from jax.experimental.pallas import tpu as pltpu


def _round_up(n: int, m: int) -> int:
    return ((n + m - 1) // m) * m


def _sigmoid(x):
    # EUP-friendly, numerically stable sigmoid (exact math identity).
    return 0.5 * (jnp.tanh(0.5 * x) + 1.0)


def mlp_kernel(x_ref,
               w1_ref, b1_ref,
               w2_ref, b2_ref,
               w3_ref, b3_ref,
               w4_ref, b4_ref,
               w5_ref, b5_ref,
               o_ref):
    # x_ref: (2, TB)  -- features on sublanes, batch on lanes.
    x = x_ref[...]
    w1 = w1_ref[...]                       # (20, 2)

    # ---- Linear(2, 20) + ReLU : K=2 -> VPU broadcast-mul-add, no MXU pass.
    h = (w1[:, 0:1] * x[0:1, :]
         + w1[:, 1:2] * x[1:2, :]
         + b1_ref[...])                    # (20, TB)
    h = jnp.maximum(h, 0.0)

    # ---- Linear(20, 30) + Sigmoid
    h = jnp.dot(w2_ref[...], h, preferred_element_type=jnp.float32) + b2_ref[...]
    h = _sigmoid(h)                        # (30, TB)

    # ---- Linear(30, 30) + ReLU
    h = jnp.dot(w3_ref[...], h, preferred_element_type=jnp.float32) + b3_ref[...]
    h = jnp.maximum(h, 0.0)                # (30, TB)

    # ---- Linear(30, 40) + Tanh
    h = jnp.dot(w4_ref[...], h, preferred_element_type=jnp.float32) + b4_ref[...]
    h = jnp.tanh(h)                        # (40, TB)

    # ---- Linear(40, 1) + Sigmoid  ->  (1, TB) lane-dense output row.
    h = jnp.dot(w5_ref[...], h, preferred_element_type=jnp.float32) + b5_ref[...]
    o_ref[...] = _sigmoid(h).astype(o_ref.dtype)


def make_params(key):
    """nn.Linear-style init. Weights in PyTorch (out, in) layout, biases (out, 1)."""
    dims = [(2, 20), (20, 30), (30, 30), (30, 40), (40, 1)]
    params = []
    for (fan_in, fan_out) in dims:
        key, kw, kb = jax.random.split(key, 3)
        bound = 1.0 / jnp.sqrt(float(fan_in))
        w = jax.random.uniform(kw, (fan_out, fan_in), jnp.float32, -bound, bound)
        b = jax.random.uniform(kb, (fan_out, 1), jnp.float32, -bound, bound)
        params.append((w, b))
    return params


@functools.partial(jax.jit, static_argnames=("tb",))
def nn_forward(x, params, *, tb: int = 1024):
    """x: (B, 2) float32 -> (B, 1) float32."""
    B, f_in = x.shape

    # Batch tile: multiple of 128 lanes, no larger than needed.
    # (On v7x budget against 64 MiB VMEM; at these widths even TB=8192 is tiny.)
    tb = max(128, min(tb, _round_up(B, 128)))
    b_pad = _round_up(B, tb)
    grid = pl.cdiv(b_pad, tb)

    # Transpose to (features, batch) and pad batch (lane axis) to a tile multiple.
    xt = jnp.pad(x.T, ((0, 0), (0, b_pad - B)))

    flat = [xt]
    in_specs = [pl.BlockSpec((f_in, tb), lambda i: (0, i))]
    for (w, b) in params:
        flat.extend([w, b])
        # Full-array blocks with constant index_map -> parameters stay
        # resident in VMEM across all grid steps (no re-DMA).
        in_specs.append(pl.BlockSpec(w.shape, lambda i: (0, 0)))
        in_specs.append(pl.BlockSpec(b.shape, lambda i: (0, 0)))

    out = pl.pallas_call(
        mlp_kernel,
        out_shape=jax.ShapeDtypeStruct((1, b_pad), jnp.float32),
        grid=(grid,),
        in_specs=in_specs,
        out_specs=pl.BlockSpec((1, tb), lambda i: (0, i)),
        compiler_params=pltpu.CompilerParams(
            dimension_semantics=("parallel",)),
    )(*flat)

    return out[0, :B].reshape(B, 1)


def nn_forward_ref(x, params):
    """Pure-JAX reference (PyTorch layout: y = x @ W^T + b^T)."""
    (w1, b1), (w2, b2), (w3, b3), (w4, b4), (w5, b5) = params
    h = jnp.maximum(x @ w1.T + b1.T, 0.0)
    h = jax.nn.sigmoid(h @ w2.T + b2.T)
    h = jnp.maximum(h @ w3.T + b3.T, 0.0)
    h = jnp.tanh(h @ w4.T + b4.T)
    return jax.nn.sigmoid(h @ w5.T + b5.T)


if __name__ == "__main__":
    key = jax.random.PRNGKey(0)
    kp, kx1, kx2 = jax.random.split(key, 3)
    params = make_params(kp)

    # Case 1: module-spec shape (batch=2, features=2).
    x_small = jax.random.normal(kx1, (2, 2), jnp.float32)
    out_small = jax.block_until_ready(nn_forward(x_small, params))
    ref_small = nn_forward_ref(x_small, params)
    assert out_small.shape == (2, 1)
    assert jnp.allclose(out_small, ref_small, atol=1e-5, rtol=1e-5), (out_small, ref_small)

    # Case 2: non-multiple batch with multiple grid steps (exercises padding,
    # pipelining and parallel batch axis).
    x_big = jax.random.normal(kx2, (300, 2), jnp.float32)
    out_big = jax.block_until_ready(nn_forward(x_big, params, tb=128))
    ref_big = nn_forward_ref(x_big, params)
    assert out_big.shape == (300, 1)
    assert jnp.allclose(out_big, ref_big, atol=1e-5, rtol=1e-5)

    print("KERNEL_OK")
</pallas_src>

<mosaic_0001>
module attributes {stable_mosaic.version = 11 : i64} {
  func.func @mlp_kernel(%arg0: i32, %arg1: memref<2x128xf32, #tpu.memory_space<vmem>>, %arg2: memref<20x2xf32, #tpu.memory_space<vmem>>, %arg3: memref<20x1xf32, #tpu.memory_space<vmem>>, %arg4: memref<30x20xf32, #tpu.memory_space<vmem>>, %arg5: memref<30x1xf32, #tpu.memory_space<vmem>>, %arg6: memref<30x30xf32, #tpu.memory_space<vmem>>, %arg7: memref<30x1xf32, #tpu.memory_space<vmem>>, %arg8: memref<40x30xf32, #tpu.memory_space<vmem>>, %arg9: memref<40x1xf32, #tpu.memory_space<vmem>>, %arg10: memref<1x40xf32, #tpu.memory_space<vmem>>, %arg11: memref<1x1xf32, #tpu.memory_space<vmem>>, %arg12: memref<1x128xf32, #tpu.memory_space<vmem>>) attributes {dimension_semantics = [#tpu.dimension_semantics<parallel>], iteration_bounds = array<i64: 1>, scalar_prefetch = 0 : i64, scratch_operands = 0 : i64, tpu.core_type = #tpu.core_type<tc>, window_params = [{transform_indices = @transform_0, window_bounds = array<i64: 2, 128>}, {pipeline_mode = #tpu.pipeline_mode<synchronous>, transform_indices = @transform_1, window_bounds = array<i64: 20, 2>}, {pipeline_mode = #tpu.pipeline_mode<synchronous>, transform_indices = @transform_2, window_bounds = array<i64: 20, 1>}, {pipeline_mode = #tpu.pipeline_mode<synchronous>, transform_indices = @transform_3, window_bounds = array<i64: 30, 20>}, {pipeline_mode = #tpu.pipeline_mode<synchronous>, transform_indices = @transform_4, window_bounds = array<i64: 30, 1>}, {pipeline_mode = #tpu.pipeline_mode<synchronous>, transform_indices = @transform_5, window_bounds = array<i64: 30, 30>}, {pipeline_mode = #tpu.pipeline_mode<synchronous>, transform_indices = @transform_6, window_bounds = array<i64: 30, 1>}, {pipeline_mode = #tpu.pipeline_mode<synchronous>, transform_indices = @transform_7, window_bounds = array<i64: 40, 30>}, {pipeline_mode = #tpu.pipeline_mode<synchronous>, transform_indices = @transform_8, window_bounds = array<i64: 40, 1>}, {pipeline_mode = #tpu.pipeline_mode<synchronous>, transform_indices = @transform_9, window_bounds = array<i64: 1, 40>}, {pipeline_mode = #tpu.pipeline_mode<synchronous>, transform_indices = @transform_10, window_bounds = array<i64: 1, 1>}, {transform_indices = @transform_11, window_bounds = array<i64: 1, 128>}]} {
    %c0 = arith.constant 0 : index
    %c0_0 = arith.constant 0 : index
    %0 = vector.load %arg1[%c0, %c0_0] : memref<2x128xf32, #tpu.memory_space<vmem>>, vector<2x128xf32>
    %c0_1 = arith.constant 0 : index
    %c0_2 = arith.constant 0 : index
    %1 = vector.load %arg2[%c0_1, %c0_2] : memref<20x2xf32, #tpu.memory_space<vmem>>, vector<20x2xf32>
    %2 = vector.extract_strided_slice %1 {offsets = [0, 0], sizes = [20, 1], strides = [1, 1]} : vector<20x2xf32> to vector<20x1xf32>
    %3 = vector.extract_strided_slice %0 {offsets = [0, 0], sizes = [1, 128], strides = [1, 1]} : vector<2x128xf32> to vector<1x128xf32>
    %4 = vector.broadcast %2 : vector<20x1xf32> to vector<20x128xf32>
    %5 = vector.broadcast %3 : vector<1x128xf32> to vector<20x128xf32>
    %6 = arith.mulf %4, %5 : vector<20x128xf32>
    %7 = vector.extract_strided_slice %1 {offsets = [0, 1], sizes = [20, 1], strides = [1, 1]} : vector<20x2xf32> to vector<20x1xf32>
    %8 = vector.extract_strided_slice %0 {offsets = [1, 0], sizes = [1, 128], strides = [1, 1]} : vector<2x128xf32> to vector<1x128xf32>
    %9 = vector.broadcast %7 : vector<20x1xf32> to vector<20x128xf32>
    %10 = vector.broadcast %8 : vector<1x128xf32> to vector<20x128xf32>
    %11 = arith.mulf %9, %10 : vector<20x128xf32>
    %12 = arith.addf %6, %11 : vector<20x128xf32>
    %c0_3 = arith.constant 0 : index
    %c0_4 = arith.constant 0 : index
    %13 = vector.load %arg3[%c0_3, %c0_4] : memref<20x1xf32, #tpu.memory_space<vmem>>, vector<20x1xf32>
    %14 = vector.broadcast %13 : vector<20x1xf32> to vector<20x128xf32>
    %15 = arith.addf %12, %14 : vector<20x128xf32>
    %cst = arith.constant 0.000000e+00 : f32
    %16 = vector.broadcast %cst : f32 to vector<20x128xf32>
    %17 = arith.maximumf %15, %16 : vector<20x128xf32>
    %c0_5 = arith.constant 0 : index
    %c0_6 = arith.constant 0 : index
    %18 = vector.load %arg4[%c0_5, %c0_6] : memref<30x20xf32, #tpu.memory_space<vmem>>, vector<30x20xf32>
    %cst_7 = arith.constant dense<0.000000e+00> : vector<30x128xf32>
    %19 = tpu.matmul %18, %17, %cst_7 {dimension_numbers = #tpu.dot_dimension_numbers<[1], [0], [0], [1], [0, 0, 1, 1], [], []>} : vector<30x20xf32>, vector<20x128xf32>, vector<30x128xf32> -> vector<30x128xf32>
    %c0_8 = arith.constant 0 : index
    %c0_9 = arith.constant 0 : index
    %20 = vector.load %arg5[%c0_8, %c0_9] : memref<30x1xf32, #tpu.memory_space<vmem>>, vector<30x1xf32>
    %21 = vector.broadcast %20 : vector<30x1xf32> to vector<30x128xf32>
    %22 = arith.addf %19, %21 : vector<30x128xf32>
    %cst_10 = arith.constant 5.000000e-01 : f32
    %23 = vector.broadcast %cst_10 : f32 to vector<30x128xf32>
    %24 = arith.mulf %23, %22 : vector<30x128xf32>
    %25 = math.tanh %24 : vector<30x128xf32>
    %cst_11 = arith.constant 1.000000e+00 : f32
    %26 = vector.broadcast %cst_11 : f32 to vector<30x128xf32>
    %27 = arith.addf %25, %26 : vector<30x128xf32>
    %cst_12 = arith.constant 5.000000e-01 : f32
    %28 = vector.broadcast %cst_12 : f32 to vector<30x128xf32>
    %29 = arith.mulf %28, %27 : vector<30x128xf32>
    %c0_13 = arith.constant 0 : index
    %c0_14 = arith.constant 0 : index
    %30 = vector.load %arg6[%c0_13, %c0_14] : memref<30x30xf32, #tpu.memory_space<vmem>>, vector<30x30xf32>
    %cst_15 = arith.constant dense<0.000000e+00> : vector<30x128xf32>
    %31 = tpu.matmul %30, %29, %cst_15 {dimension_numbers = #tpu.dot_dimension_numbers<[1], [0], [0], [1], [0, 0, 1, 1], [], []>} : vector<30x30xf32>, vector<30x128xf32>, vector<30x128xf32> -> vector<30x128xf32>
    %c0_16 = arith.constant 0 : index
    %c0_17 = arith.constant 0 : index
    %32 = vector.load %arg7[%c0_16, %c0_17] : memref<30x1xf32, #tpu.memory_space<vmem>>, vector<30x1xf32>
    %33 = vector.broadcast %32 : vector<30x1xf32> to vector<30x128xf32>
    %34 = arith.addf %31, %33 : vector<30x128xf32>
    %cst_18 = arith.constant 0.000000e+00 : f32
    %35 = vector.broadcast %cst_18 : f32 to vector<30x128xf32>
    %36 = arith.maximumf %34, %35 : vector<30x128xf32>
    %c0_19 = arith.constant 0 : index
    %c0_20 = arith.constant 0 : index
    %37 = vector.load %arg8[%c0_19, %c0_20] : memref<40x30xf32, #tpu.memory_space<vmem>>, vector<40x30xf32>
    %cst_21 = arith.constant dense<0.000000e+00> : vector<40x128xf32>
    %38 = tpu.matmul %37, %36, %cst_21 {dimension_numbers = #tpu.dot_dimension_numbers<[1], [0], [0], [1], [0, 0, 1, 1], [], []>} : vector<40x30xf32>, vector<30x128xf32>, vector<40x128xf32> -> vector<40x128xf32>
    %c0_22 = arith.constant 0 : index
    %c0_23 = arith.constant 0 : index
    %39 = vector.load %arg9[%c0_22, %c0_23] : memref<40x1xf32, #tpu.memory_space<vmem>>, vector<40x1xf32>
    %40 = vector.broadcast %39 : vector<40x1xf32> to vector<40x128xf32>
    %41 = arith.addf %38, %40 : vector<40x128xf32>
    %42 = math.tanh %41 : vector<40x128xf32>
    %c0_24 = arith.constant 0 : index
    %c0_25 = arith.constant 0 : index
    %43 = vector.load %arg10[%c0_24, %c0_25] : memref<1x40xf32, #tpu.memory_space<vmem>>, vector<1x40xf32>
    %cst_26 = arith.constant dense<0.000000e+00> : vector<1x128xf32>
    %44 = tpu.matmul %43, %42, %cst_26 {dimension_numbers = #tpu.dot_dimension_numbers<[1], [0], [0], [1], [0, 0, 1, 1], [], []>} : vector<1x40xf32>, vector<40x128xf32>, vector<1x128xf32> -> vector<1x128xf32>
    %c0_27 = arith.constant 0 : index
    %c0_28 = arith.constant 0 : index
    %45 = vector.load %arg11[%c0_27, %c0_28] : memref<1x1xf32, #tpu.memory_space<vmem>>, vector<1x1xf32>
    %46 = vector.broadcast %45 : vector<1x1xf32> to vector<1x128xf32>
    %47 = arith.addf %44, %46 : vector<1x128xf32>
    %cst_29 = arith.constant 5.000000e-01 : f32
    %48 = vector.broadcast %cst_29 : f32 to vector<1x128xf32>
    %49 = arith.mulf %48, %47 : vector<1x128xf32>
    %50 = math.tanh %49 : vector<1x128xf32>
    %cst_30 = arith.constant 1.000000e+00 : f32
    %51 = vector.broadcast %cst_30 : f32 to vector<1x128xf32>
    %52 = arith.addf %50, %51 : vector<1x128xf32>
    %cst_31 = arith.constant 5.000000e-01 : f32
    %53 = vector.broadcast %cst_31 : f32 to vector<1x128xf32>
    %54 = arith.mulf %53, %52 : vector<1x128xf32>
    %c0_32 = arith.constant 0 : index
    %c0_33 = arith.constant 0 : index
    %55 = vector.load %arg12[%c0_32, %c0_33] : memref<1x128xf32, #tpu.memory_space<vmem>>, vector<1x128xf32>
    tpu.vector_store %arg12[%c0_32, %c0_33], %54 {strides = array<i32>} : memref<1x128xf32, #tpu.memory_space<vmem>>, vector<1x128xf32>,
    return
  }
  func.func @transform_0(%arg0: i32) -> (i32, i32) {
    %c0_i32 = arith.constant 0 : i32
    %c0_i32_0 = arith.constant 0 : i32
    return %c0_i32, %arg0 : i32, i32
  }
  func.func @transform_1(%arg0: i32) -> (i32, i32) {
    %c0_i32 = arith.constant 0 : i32
    %c0_i32_0 = arith.constant 0 : i32
    %c0_i32_1 = arith.constant 0 : i32
    return %c0_i32, %c0_i32_0 : i32, i32
  }
  func.func @transform_2(%arg0: i32) -> (i32, i32) {
    %c0_i32 = arith.constant 0 : i32
    %c0_i32_0 = arith.constant 0 : i32
    %c0_i32_1 = arith.constant 0 : i32
    return %c0_i32, %c0_i32_0 : i32, i32
  }
  func.func @transform_3(%arg0: i32) -> (i32, i32) {
    %c0_i32 = arith.constant 0 : i32
    %c0_i32_0 = arith.constant 0 : i32
    %c0_i32_1 = arith.constant 0 : i32
    return %c0_i32, %c0_i32_0 : i32, i32
  }
  func.func @transform_4(%arg0: i32) -> (i32, i32) {
    %c0_i32 = arith.constant 0 : i32
    %c0_i32_0 = arith.constant 0 : i32
    %c0_i32_1 = arith.constant 0 : i32
    return %c0_i32, %c0_i32_0 : i32, i32
  }
  func.func @transform_5(%arg0: i32) -> (i32, i32) {
    %c0_i32 = arith.constant 0 : i32
    %c0_i32_0 = arith.constant 0 : i32
    %c0_i32_1 = arith.constant 0 : i32
    return %c0_i32, %c0_i32_0 : i32, i32
  }
  func.func @transform_6(%arg0: i32) -> (i32, i32) {
    %c0_i32 = arith.constant 0 : i32
    %c0_i32_0 = arith.constant 0 : i32
    %c0_i32_1 = arith.constant 0 : i32
    return %c0_i32, %c0_i32_0 : i32, i32
  }
  func.func @transform_7(%arg0: i32) -> (i32, i32) {
    %c0_i32 = arith.constant 0 : i32
    %c0_i32_0 = arith.constant 0 : i32
    %c0_i32_1 = arith.constant 0 : i32
    return %c0_i32, %c0_i32_0 : i32, i32
  }
  func.func @transform_8(%arg0: i32) -> (i32, i32) {
    %c0_i32 = arith.constant 0 : i32
    %c0_i32_0 = arith.constant 0 : i32
    %c0_i32_1 = arith.constant 0 : i32
    return %c0_i32, %c0_i32_0 : i32, i32
  }
  func.func @transform_9(%arg0: i32) -> (i32, i32) {
    %c0_i32 = arith.constant 0 : i32
    %c0_i32_0 = arith.constant 0 : i32
    %c0_i32_1 = arith.constant 0 : i32
    return %c0_i32, %c0_i32_0 : i32, i32
  }
  func.func @transform_10(%arg0: i32) -> (i32, i32) {
    %c0_i32 = arith.constant 0 : i32
    %c0_i32_0 = arith.constant 0 : i32
    %c0_i32_1 = arith.constant 0 : i32
    return %c0_i32, %c0_i32_0 : i32, i32
  }
  func.func @transform_11(%arg0: i32) -> (i32, i32) {
    %c0_i32 = arith.constant 0 : i32
    %c0_i32_0 = arith.constant 0 : i32
    return %c0_i32, %arg0 : i32, i32
  }
}

</mosaic_0001>

<bundles_post_ra>
// kernel: nn_forward.1
= control target key start
LH: loop header
LB: loop body
LE: loop exit
PB: predicated region body
PF: predicated region fallthrough
CT: control target
= control target key end

     0   :  { %v773_v0 = vmov 0   ;;  %v774_v4 = vmov 1   ;;  %vm140_vm0 = vcmask 162816   ;;  %v59_v24 = vlaneseq  ;;  %s990_s1 = inlined_call_operand.vmem [shape: f32[20,2], index: 1, kind: input, shape index: {}]   ;;  %s991_s10 = inlined_call_operand.<no memory space> [shape: f32[1,1], index: 10, kind: input, shape index: {}]   ;;  %s992_s2 = inlined_call_operand.vmem [shape: f32[20,1], index: 2, kind: input, shape index: {}]   ;;  %s993_s4 = inlined_call_operand.vmem [shape: f32[30,1], index: 4, kind: input, shape index: {}]   ;;  %s994_s3 = inlined_call_operand.vmem [shape: f32[30,20], index: 3, kind: input, shape index: {}]   ;;  %s995_s6 = inlined_call_operand.vmem [shape: f32[30,1], index: 6, kind: input, shape index: {}]   ;;  %s996_s8 = inlined_call_operand.vmem [shape: f32[40,1], index: 8, kind: input, shape index: {}]   ;;  %s997_s0 = inlined_call_operand.vmem [shape: f32[2,128], index: 0, kind: input, shape index: {}]   ;;  %s998_s5 = inlined_call_operand.vmem [shape: f32[30,30], index: 5, kind: input, shape index: {}]   ;;  %s999_s7 = inlined_call_operand.vmem [shape: f32[40,30], index: 7, kind: input, shape index: {}]   ;;  %s1000_s9 = inlined_call_operand.vmem [shape: f32[1,40], index: 9, kind: input, shape index: {}]   ;;  %s1001_s11 = inlined_call_operand.vmem [shape: f32[1,128], index: 11, kind: output, shape index: {}]  }
   0x1   :  { %749 = vset.pattern.permute.xlu1 %v773_v0  ;;  %747 = vset.pattern.permute.xlu0 %v773_v0  ;;  %v43_v1 = vld [vmem:[%s990_s1 + $0x10] sm:$0xf]  ;;  %v42_v2 = vld [vmem:[%s990_s1 + $0x8] sm:$0xff]  ;;  %v16_v3 = vstv %s991_s10  ;;  %v41_v5 = vld [vmem:[%s990_s1] sm:$0xff]  ;;  %vm153_vm1 = vcmask 1043456   ;;  %vm286_vm2 = vcmask 244736  }
   0x2   :  { %56 = vperm.xlu0 %747, %v43_v1   ;;  %51 = vperm.xlu1 %749, %v42_v2   ;;  %17 = vst [vmem:[#allocation2] sm:$0x1] %v16_v3  ;;  %v89_v6 = vld [vmem:[%s992_s2 + $0x8] sm:$0xff]  ;;  %v90_v7 = vld [vmem:[%s992_s2 + $0x10] sm:$0xf]  ;;  %v88_v9 = vld [vmem:[%s992_s2] sm:$0xff] }
   0x3   :  { %v118_v8 = vld [vmem:[%s993_s4 + $0x10] sm:$0xff]  ;;  %v112_v10 = vld [vmem:[%s994_s3] sm:$0xff]  ;;  %v119_v12 = vld [vmem:[%s993_s4 + $0x18] sm:$0x3f]  ;;  %v901_v25 = vshrl.u32 %v59_v24, 7  ;;  %vm299_vm3 = vcmask 1045504  }
   0x4   :  { %v116_v11 = vld [vmem:[%s993_s4] sm:$0xff]  ;;  %687 = vmatprep.mubr.msk.f32.mxu1 %vm140_vm0, %v112_v10  ;;  %v264_v13 = vld [vmem:[%s995_s6 + $0x10] sm:$0xff]  ;;  %v117_v14 = vld [vmem:[%s993_s4 + $0x8] sm:$0xff]  ;;  %vm776_vm4 = vmmov 0   ;;  %vm551_vm5 = vcmask 326656  }
   0x5   :  { %v262_v15 = vld [vmem:[%s995_s6] sm:$0xff]  ;;  %v265_v16 = vld [vmem:[%s995_s6 + $0x18] sm:$0x3f]  ;;  %v263_v18 = vld [vmem:[%s995_s6 + $0x8] sm:$0xff]  ;;  %v80_v28 = vsub.s32 1, %v901_v25  ;;  %v61_v29 = vsub.s32 0, %v901_v25 }
   0x6   :  { %748 = vset.pattern.permute.xlu0 %v774_v4  ;;  %750 = vset.pattern.permute.xlu1 %v774_v4  ;;  %v400_v17 = vld [vmem:[%s996_s8 + $0x18] sm:$0xff]  ;;  %v398_v19 = vld [vmem:[%s996_s8 + $0x8] sm:$0xff]  ;;  %v401_v20 = vld [vmem:[%s996_s8 + $0x20] sm:$0xff] }
   0x7   :  { %75 = vperm.xlu0 %748, %v43_v1   ;;  %71 = vperm.xlu1 %750, %v42_v2   ;;  %v399_v22 = vld [vmem:[%s996_s8 + $0x10] sm:$0xff]  ;;  %v397_v23 = vld [vmem:[%s996_s8] sm:$0xff]  ;;  %v113_v55 = vld [vmem:[%s994_s3 + $0x8] sm:$0xff] }
   0x8   :  { %v40_v30 = vld [vmem:[%s997_s0] sm:$0x3]  ;;  %v114_v56 = vld [vmem:[%s994_s3 + $0x10] sm:$0xff]  ;;  %v115_v57 = vld [vmem:[%s994_s3 + $0x18] sm:$0x3f] }
   0x9   :  { %v541_v21 = vld [vmem:[#allocation2] sm:$0x1]  ;;  %v81_v32 = vrot.slane %v40_v30, %v80_v28  ;;  %v62_v34 = vrot.slane %v40_v30, %v61_v29  ;;  %v260_v24 = vld [vmem:[%s998_s5 + $0x10] sm:$0xff] }
   0xa   :  { %v258_v58 = vld [vmem:[%s998_s5] sm:$0xff] }
   0xb   :  { %751 = vset.pattern.permute.xlu1 %v773_v0  ;;  %67 = vperm.xlu0 %748, %v41_v5  }
   0xc   :  { %46 = vperm.xlu1 %751, %v41_v5  }
   0xf   :  { %752 = vset.pattern.permute.xlu0 %v773_v0 }
  0x10   :  { %98 = vperm.xlu0 %752, %v89_v6   ;;  %103 = vperm.xlu1 %751, %v90_v7  }
  0x14   :  { %132 = vperm.xlu0 %752, %v118_v8   ;;  %93 = vperm.xlu1 %751, %v88_v9  }
  0x18   :  { %122 = vperm.xlu0 %752, %v116_v11   ;;  %137 = vperm.xlu1 %751, %v119_v12  }
  0x1c   :  { %278 = vperm.xlu0 %752, %v264_v13   ;;  %127 = vperm.xlu1 %751, %v117_v14  }
  0x20   :  { %268 = vperm.xlu0 %752, %v262_v15   ;;  %283 = vperm.xlu1 %751, %v265_v16  }
  0x24   :  { %419 = vperm.xlu0 %752, %v400_v17   ;;  %273 = vperm.xlu1 %751, %v263_v18  }
  0x28   :  { %409 = vperm.xlu0 %752, %v398_v19   ;;  %424 = vperm.xlu1 %751, %v401_v20  }
  0x2c   :  { %544 = vperm.xlu0 %752, %v541_v21   ;;  %414 = vperm.xlu1 %751, %v399_v22  }
  0x30   :  { %404 = vperm.xlu1 %751, %v397_v23   ;;  %v259_v23 = vld [vmem:[%s998_s5 + $0x8] sm:$0xff] }
  0x7d   :  { %v52_v26 = vpop.permute.xlu1 %51  ;;  %v57_v27 = vpop.permute.xlu0 %56 }
  0x7e   :  { %v64_v39 = vmul.f32 %v62_v34, %v52_v26  ;;  %v65_v40 = vmul.f32 %v62_v34, %v57_v27  ;;  %v261_v26 = vld [vmem:[%s998_s5 + $0x18] sm:$0x3f]  ;;  %v775_v27 = vmov 0.0  }
  0x7f   :  { %707 = vmatprep.subr.mxu0 %v775_v27  ;;  %715 = vmatprep.mubr.msk.f32.mxu0 %vm776_vm4, %v775_v27 }
  0x82   :  { %v76_v31 = vpop.permute.xlu0 %75  ;;  %v72_v33 = vpop.permute.xlu1 %71 }
  0x83   :  { %v84_v35 = vmul.f32 %v81_v32, %v76_v31  ;;  %v83_v36 = vmul.f32 %v81_v32, %v72_v33 }
  0x85   :  { %v86_v43 = vadd.f32 %v83_v36, %v64_v39  ;;  %v87_v44 = vadd.f32 %v84_v35, %v65_v40 }
  0x86   :  { %v68_v37 = vpop.permute.xlu0 %67 }
  0x87   :  { %v47_v38 = vpop.permute.xlu1 %46  ;;  %v82_v41 = vmul.f32 %v81_v32, %v68_v37 }
  0x88   :  { %v63_v42 = vmul.f32 %v62_v34, %v47_v38 }
  0x8a   :  { %v85_v50 = vadd.f32 %v82_v41, %v63_v42 }
  0x8b   :  { %v99_v45 = vpop.permute.xlu0 %98  ;;  %v104_v46 = vpop.permute.xlu1 %103 }
  0x8c   :  { %v107_v47 = vadd.f32 %v99_v45, %v86_v43  ;;  %v108_v48 = vadd.f32 %v104_v46, %v87_v44  ;;  %v392_v45 = vld [vmem:[%s999_s7] sm:$0xff]  ;;  %v393_v46 = vld [vmem:[%s999_s7 + $0x8] sm:$0xff] }
  0x8e   :  { %v111_v49 = vmax.f32 %v108_v48, 0.0  ;;  %v110_v52 = vmax.f32 %v107_v47, 0.0  ;;  %v394_v47 = vld [vmem:[%s999_s7 + $0x10] sm:$0xff]  ;;  %v395_v48 = vld [vmem:[%s999_s7 + $0x18] sm:$0xff] }
  0x8f   :  { %v94_v51 = vpop.permute.xlu1 %93  ;;  %v133_v60 = vpop.permute.xlu0 %132 }
  0x90   :  { %v106_v53 = vadd.f32 %v94_v51, %v85_v50  ;;  %681 = vmatprep.subr.msk.mxu1 %vm153_vm1, %v111_v49 }
  0x91   :  { %682 = vmatpush3.msk.msra.mxu1 %vm153_vm1, %v111_v49  ;;  %v396_v49 = vld [vmem:[%s999_s7 + $0x20] sm:$0xff] }
  0x92   :  { %v109_v54 = vmax.f32 %v106_v53, 0.0  ;;  %683 = vmatprep.subr.mxu1 %v110_v52 }
  0x93   :  { %684 = vmatpush3.msra.mxu1 %v110_v52  ;;  %v138_v59 = vpop.permute.xlu1 %137  ;;  %v123_v0 = vpop.permute.xlu0 %122 }
  0x94   :  { %685 = vmatprep.subr.mxu1 %v109_v54 }
  0x95   :  { %686 = vmatpush3.msra.mxu1 %v109_v54 }
  0x96   :  { %688 = vmatmul.mubr.msk.f32.vlgmr.msra.gmra.mxu1 %vm140_vm0, %v113_v55 }
  0x97   :  { %690 = vmatprep.mubr.msk.f32.mxu1 %vm140_vm0, %v114_v56  ;;  %v128_v61 = vpop.permute.xlu1 %127  ;;  %v279_v31 = vpop.permute.xlu0 %278 }
  0x9a   :  { %691 = vmatmul.mubr.msk.f32.gmra.mxu1 %vm140_vm0, %v115_v57 }
  0x9b   :  { %701 = vmatprep.mubr.msk.f32.mxu1 %vm286_vm2, %v258_v58  ;;  %v284_v28 = vpop.permute.xlu1 %283  ;;  %v269_v40 = vpop.permute.xlu0 %268 }
  0x9f   :  { %v274_v35 = vpop.permute.xlu1 %273  ;;  %v420_v58 = vpop.permute.xlu0 %419 }
  0xa3   :  { %v425_v55 = vpop.permute.xlu1 %424 }
 0x156   :  { %v689_v62 = vpop.f32.mrf.mxu1 }
 0x157   :  { %v229_v63 = vadd.f32 %v689_v62, %v128_v61 }
 0x158   :  { %v223_v1 = vpop.f32.mrf.mxu1 }
 0x159   :  { %v224_v2 = vadd.f32 %v223_v1, %v123_v0  ;;  %v243_v3 = vmul.f32 0.5, %v229_v63 }
 0x15a   :  { %v692_v4 = vpop.f32.mrf.mxu1 }
 0x15b   :  { %v239_v5 = vadd.f32 %v692_v4, %v138_v59  ;;  %v242_v6 = vmul.f32 0.5, %v224_v2  ;;  %753 = vtanh.f32 %v243_v3  ;;  %v410_v2 = vpop.permute.xlu0 %409 }
 0x15c   :  { %v233_v7 = vpop.f32.mrf.mxu1 }
 0x15d   :  { %v245_v8 = vmul.f32 0.5, %v239_v5  ;;  %v234_v9 = vadd.f32 %v233_v7, %v133_v60  ;;  %v415_v60 = vpop.permute.xlu1 %414 }
 0x15f   :  { %755 = vtanh.f32 %v245_v8  ;;  %v244_v10 = vmul.f32 0.5, %v234_v9 }
 0x160   :  { %757 = vtanh.f32 %v242_v6 }
 0x161   :  { %759 = vtanh.f32 %v244_v10  ;;  %v405_v4 = vpop.permute.xlu1 %404  ;;  %v540_v10 = vld [vmem:[%s1000_s9] sm:$0x1] }
 0x168   :  { %v754_v11 = vpop.eup %753 }
 0x169   :  { %v251_v18 = vadd.f32 1.0, %v754_v11 }
 0x16b   :  { %v255_v21 = vmul.f32 0.5, %v251_v18 }
 0x16c   :  { %v756_v12 = vpop.eup %755 }
 0x16d   :  { %v758_v13 = vpop.eup %757  ;;  %v253_v14 = vadd.f32 1.0, %v756_v12  ;;  %v545_v12 = vpop.permute.xlu0 %544 }
 0x16e   :  { %v760_v15 = vpop.eup %759  ;;  %v250_v20 = vadd.f32 1.0, %v758_v13  ;;  %v550_v13 = vrot.slane %v545_v12, %v61_v29 }
 0x16f   :  { %v257_v16 = vmul.f32 0.5, %v253_v14  ;;  %v252_v17 = vadd.f32 1.0, %v760_v15 }
 0x170   :  { %v254_v22 = vmul.f32 0.5, %v250_v20 }
 0x171   :  { %693 = vmatprep.subr.msk.mxu1 %vm299_vm3, %v257_v16  ;;  %v256_v19 = vmul.f32 0.5, %v252_v17 }
 0x172   :  { %694 = vmatpush3.msk.msra.mxu1 %vm299_vm3, %v257_v16 }
 0x173   :  { %695 = vmatprep.subr.mxu1 %v256_v19 }
 0x174   :  { %696 = vmatpush3.msra.mxu1 %v256_v19 }
 0x175   :  { %697 = vmatprep.subr.mxu1 %v255_v21 }
 0x176   :  { %698 = vmatpush3.msra.mxu1 %v255_v21 }
 0x177   :  { %699 = vmatprep.subr.mxu1 %v254_v22 }
 0x178   :  { %700 = vmatpush3.msra.mxu1 %v254_v22 }
 0x179   :  { %702 = vmatmul.mubr.msk.f32.vlgmr.msra.gmra.mxu1 %vm286_vm2, %v259_v23  ;;  %730 = vmatprep.subr.mxu1 %v775_v27 }
 0x17a   :  { %704 = vmatprep.mubr.msk.f32.mxu1 %vm286_vm2, %v260_v24 }
 0x17d   :  { %705 = vmatmul.mubr.msk.f32.gmra.mxu1 %vm286_vm2, %v261_v26 }
 0x17e   :  { %740 = vmatprep.mubr.msk.f32.mxu1 %vm776_vm4, %v775_v27 }
 0x239   :  { %v703_v30 = vpop.f32.mrf.mxu1 }
 0x23a   :  { %v375_v37 = vadd.f32 %v703_v30, %v274_v35 }
 0x23b   :  { %v369_v32 = vpop.f32.mrf.mxu1 }
 0x23c   :  { %v370_v41 = vadd.f32 %v369_v32, %v269_v40  ;;  %v389_v43 = vmax.f32 %v375_v37, 0.0 }
 0x23d   :  { %v706_v33 = vpop.f32.mrf.mxu1 }
 0x23e   :  { %v385_v34 = vadd.f32 %v706_v33, %v284_v28  ;;  %v388_v44 = vmax.f32 %v370_v41, 0.0 }
 0x23f   :  { %v379_v36 = vpop.f32.mrf.mxu1 }
 0x240   :  { %v391_v38 = vmax.f32 %v385_v34, 0.0  ;;  %v380_v39 = vadd.f32 %v379_v36, %v279_v31 }
 0x242   :  { %v390_v42 = vmax.f32 %v380_v39, 0.0  ;;  %708 = vmatpush3.msk.msra.mxu0 %vm299_vm3, %v391_v38 }
 0x243   :  { %709 = vmatprep.subr.mxu0 %v775_v27 }
 0x244   :  { %710 = vmatpush3.msra.mxu0 %v390_v42 }
 0x245   :  { %711 = vmatprep.subr.mxu0 %v775_v27 }
 0x246   :  { %712 = vmatpush3.msra.mxu0 %v389_v43 }
 0x247   :  { %713 = vmatprep.subr.mxu0 %v775_v27 }
 0x248   :  { %714 = vmatpush3.msra.mxu0 %v388_v44 }
 0x249   :  { %716 = vmatmul.mubr.msk.f32.vlgmr.msra.gmra.mxu0 %vm286_vm2, %v392_v45 }
 0x24a   :  { %718 = vmatprep.mubr.msk.f32.mxu0 %vm776_vm4, %v775_v27 }
 0x24d   :  { %719 = vmatmul.mubr.msk.f32.gmra.mxu0 %vm286_vm2, %v393_v46 }
 0x24e   :  { %721 = vmatprep.mubr.msk.f32.mxu0 %vm776_vm4, %v775_v27 }
 0x251   :  { %722 = vmatmul.mubr.msk.f32.gmra.mxu0 %vm286_vm2, %v394_v47 }
 0x252   :  { %724 = vmatprep.mubr.msk.f32.mxu0 %vm776_vm4, %v775_v27 }
 0x255   :  { %725 = vmatmul.mubr.msk.f32.gmra.mxu0 %vm286_vm2, %v395_v48 }
 0x256   :  { %727 = vmatprep.mubr.msk.f32.mxu0 %vm776_vm4, %v775_v27 }
 0x259   :  { %728 = vmatmul.mubr.msk.f32.gmra.mxu0 %vm286_vm2, %v396_v49 }
 0x309   :  { %v511_v50 = vpop.f32.mrf.mxu0 }
 0x30a   :  { %v512_v5 = vadd.f32 %v511_v50, %v405_v4 }
 0x30b   :  { %v717_v51 = vpop.f32.mrf.mxu0 }
 0x30d   :  { %v516_v52 = vpop.f32.mrf.mxu0 }
 0x30e   :  { %v517_v3 = vadd.f32 %v516_v52, %v410_v2 }
 0x30f   :  { %v720_v53 = vpop.f32.mrf.mxu0 }
 0x311   :  { %v521_v54 = vpop.f32.mrf.mxu0 }
 0x312   :  { %v522_v1 = vadd.f32 %v521_v54, %v415_v60 }
 0x313   :  { %v723_v56 = vpop.f32.mrf.mxu0 }
 0x315   :  { %v526_v57 = vpop.f32.mrf.mxu0 }
 0x316   :  { %v527_v62 = vadd.f32 %v526_v57, %v420_v58 }
 0x317   :  { %v726_v59 = vpop.f32.mrf.mxu0 }
 0x319   :  { %v531_v61 = vpop.f32.mrf.mxu0 }
 0x31a   :  { %v532_v63 = vadd.f32 %v531_v61, %v425_v55 }
 0x31b   :  { %v729_v0 = vpop.f32.mrf.mxu0 }
 0x31c   :  { %761 = vtanh.f32 %v532_v63 }
 0x31d   :  { %763 = vtanh.f32 %v527_v62 }
 0x31e   :  { %765 = vtanh.f32 %v522_v1 }
 0x31f   :  { %767 = vtanh.f32 %v517_v3 }
 0x320   :  { %769 = vtanh.f32 %v512_v5 }
 0x329   :  { %v762_v6 = vpop.eup %761 }
 0x32a   :  { %731 = vmatpush3.msra.mxu1 %v762_v6  ;;  %v764_v7 = vpop.eup %763 }
 0x32b   :  { %732 = vmatprep.subr.mxu1 %v775_v27  ;;  %v766_v8 = vpop.eup %765 }
 0x32c   :  { %733 = vmatpush3.msra.mxu1 %v764_v7  ;;  %v768_v9 = vpop.eup %767 }
 0x32d   :  { %734 = vmatprep.subr.mxu1 %v775_v27  ;;  %v770_v11 = vpop.eup %769 }
 0x32e   :  { %735 = vmatpush3.msra.mxu1 %v766_v8 }
 0x32f   :  { %736 = vmatprep.subr.mxu1 %v775_v27 }
 0x330   :  { %737 = vmatpush3.msra.mxu1 %v768_v9 }
 0x331   :  { %738 = vmatprep.subr.mxu1 %v775_v27 }
 0x332   :  { %739 = vmatpush3.msra.mxu1 %v770_v11 }
 0x333   :  { %741 = vmatmul.mubr.msk.f32.vlgmr.msra.gmra.mxu1 %vm551_vm5, %v540_v10 }
 0x3f3   :  { %v621_v14 = vpop.f32.mrf.mxu1 }
 0x3f4   :  { %v622_v15 = vadd.f32 %v621_v14, %v550_v13 }
 0x3f5   :  { %v742_v16 = vpop.f32.mrf.mxu1 }
 0x3f6   :  { %v625_v17 = vmul.f32 0.5, %v622_v15 }
 0x3f8   :  { %771 = vtanh.f32 %v625_v17 }
 0x405   :  { %v772_v18 = vpop.eup %771 }
 0x406   :  { %v627_v19 = vadd.f32 1.0, %v772_v18 }
 0x408   :  { %v628_v20 = vmul.f32 0.5, %v627_v19 }
 0x40a   :  { %629 = vst [vmem:[%s1001_s11] sm:$0x1] %v628_v20 }

</bundles_post_ra>
